<compile_context>
chip_gen: v6e
topology: v6e:2x2x1
jax: 0.10.0
libtpu: 0.0.40
codegen_flags: <defaults>
</compile_context>

<pallas_src>
import jax
import jax.numpy as jnp
from jax.experimental import pallas as pl
from jax.experimental.pallas import tpu as pltpu


_TARGET_BLOCK_BYTES = 4 << 20        # ~4 MiB f32 per block
_SPLIT_THRESHOLD_BYTES = 512 << 10   # split into >=2 grid steps above this
_VMEM_LIMIT_BYTES = 32 << 20         # covers 4 x 4 MiB pipelined buffers on all chips


def _conv1x1_leakyrelu_kernel(params_ref, x_ref, o_ref):
    # params_ref: SMEM (3,) -> [weight, bias, negative_slope]
    w = params_ref[0]
    b = params_ref[1]
    ns = params_ref[2]
    y = x_ref[...] * w + b                     # 1x1 conv, 1->1 channel == affine
    o_ref[...] = jnp.where(y > 0, y, y * ns)   # torch.where(x2 > 0, x2, x2*ns)


def _choose_layout(total, rows_natural, lane_natural):
    """Pick a zero-copy 2D (rows, lane) view of the flattened input."""
    # Prefer a wide lane dim (multiple of 128) for unmasked, lane-dense stores.
    for cand in (2048, 1024, 512, 256, 128):
        if total % cand == 0:
            return total // cand, cand
    # Ragged fallback: natural (N*C*H, W) layout.  The last dim equals the
    # full array dim, which satisfies the (8,128) BlockSpec constraint with
    # no padding / concatenate copies (stores may be lane-masked, but HBM
    # traffic stays at the 2x minimum).
    return rows_natural, lane_natural


def _choose_block_rows(rows, lane):
    bytes_per_row = lane * 4
    total_bytes = rows * bytes_per_row
    if total_bytes <= _SPLIT_THRESHOLD_BYTES or rows < 16:
        # Small input: one block (splitting only adds per-step overhead).
        return rows
    # Large input: ~4 MiB blocks, but never fewer than 2 grid steps so the
    # "parallel" axis can be sharded over both v7x TensorCores.
    target_rows = max(8, (_TARGET_BLOCK_BYTES // bytes_per_row) // 8 * 8)
    half_rows = max(8, (rows // 2) // 8 * 8)
    return min(target_rows, half_rows)


def model_forward(x_nchw, conv_weight, conv_bias, negative_slope):
    """x_nchw: (N, 1, H, W) float32.  Returns (N, 1, H, W) float32."""
    N, C, H, W = x_nchw.shape
    assert C == 1, "self.conv expects 1 input channel"
    total = N * C * H * W

    rows, lane = _choose_layout(total, N * C * H, W)
    x2d = x_nchw.reshape(rows, lane)           # contiguous reshape -> no copy

    block_rows = _choose_block_rows(rows, lane)
    grid = (pl.cdiv(rows, block_rows),)        # edge block (if any) is masked

    params = jnp.array(
        [conv_weight.reshape(()), conv_bias.reshape(()), negative_slope],
        dtype=jnp.float32,
    )

    out2d = pl.pallas_call(
        _conv1x1_leakyrelu_kernel,
        out_shape=jax.ShapeDtypeStruct((rows, lane), jnp.float32),
        grid_spec=pltpu.PrefetchScalarGridSpec(
            num_scalar_prefetch=0,
            grid=grid,
            in_specs=[
                pl.BlockSpec(memory_space=pltpu.MemorySpace.SMEM),
                pl.BlockSpec((block_rows, lane), lambda i: (i, 0)),
            ],
            out_specs=pl.BlockSpec((block_rows, lane), lambda i: (i, 0)),
        ),
        compiler_params=pltpu.CompilerParams(
            dimension_semantics=("parallel",),
            vmem_limit_bytes=_VMEM_LIMIT_BYTES,
        ),
    )(params, x2d)

    return out2d.reshape(N, C, H, W)


if __name__ == "__main__":
    key = jax.random.PRNGKey(0)
    k_x, k_w, k_b, k_x2, k_x3 = jax.random.split(key, 5)

    # Deterministic Conv2d(1, 1, 1) parameters.
    conv_weight = jax.random.normal(k_w, (1, 1, 1, 1), dtype=jnp.float32)
    conv_bias = jax.random.normal(k_b, (1,), dtype=jnp.float32)
    # Non-trivial slope so the negative branch of the where() is exercised
    # (the module's default of 1.0 would make it an identity).
    negative_slope = 0.01

    def ref_fn(x):
        y = x * conv_weight.reshape(()) + conv_bias.reshape(())
        return jnp.where(y > 0, y, y * negative_slope)

    cases = {
        # Primary small shape consistent with the forward pass (C == 1).
        "aligned_small": jax.random.normal(k_x, (2, 1, 16, 16), dtype=jnp.float32),
        # Ragged element count (not a multiple of 128) -> natural-layout path.
        "ragged": jax.random.normal(k_x2, (2, 1, 16, 15), dtype=jnp.float32),
        # >512 KiB -> exercises the multi-block / two-grid-step path.
        "multi_block": jax.random.normal(k_x3, (1, 1, 96, 2048), dtype=jnp.float32),
    }

    for name, x in cases.items():
        out = model_forward(x, conv_weight, conv_bias, negative_slope)
        jax.block_until_ready(out)
        assert out.shape == x.shape, f"shape mismatch: {name}"
        assert jnp.allclose(out, ref_fn(x), atol=1e-6), f"mismatch vs reference: {name}"

    print("KERNEL_OK")
</pallas_src>

<mosaic_0001>
module attributes {stable_mosaic.version = 11 : i64} {
  func.func @_conv1x1_leakyrelu_kernel(%arg0: i32, %arg1: memref<3xf32, #tpu.memory_space<smem>>, %arg2: memref<1x512xf32, #tpu.memory_space<vmem>>, %arg3: memref<1x512xf32, #tpu.memory_space<vmem>>) attributes {dimension_semantics = [#tpu.dimension_semantics<parallel>], iteration_bounds = array<i64: 1>, scalar_prefetch = 0 : i64, scratch_operands = 0 : i64, tpu.core_type = #tpu.core_type<tc>, window_params = [{transform_indices = @transform_0, window_bounds = array<i64: 3>}, {transform_indices = @transform_1, window_bounds = array<i64: 1, 512>}, {transform_indices = @transform_2, window_bounds = array<i64: 1, 512>}]} {
    %c0 = arith.constant 0 : index
    %0 = memref.load %arg1[%c0] : memref<3xf32, #tpu.memory_space<smem>>
    %c1 = arith.constant 1 : index
    %1 = memref.load %arg1[%c1] : memref<3xf32, #tpu.memory_space<smem>>
    %c2 = arith.constant 2 : index
    %2 = memref.load %arg1[%c2] : memref<3xf32, #tpu.memory_space<smem>>
    %c0_0 = arith.constant 0 : index
    %c0_1 = arith.constant 0 : index
    %3 = vector.load %arg2[%c0_0, %c0_1] : memref<1x512xf32, #tpu.memory_space<vmem>>, vector<1x512xf32>
    %4 = vector.broadcast %0 : f32 to vector<1x512xf32>
    %5 = arith.mulf %3, %4 : vector<1x512xf32>
    %6 = vector.broadcast %1 : f32 to vector<1x512xf32>
    %7 = arith.addf %5, %6 : vector<1x512xf32>
    %cst = arith.constant 0.000000e+00 : f32
    %8 = vector.broadcast %cst : f32 to vector<1x512xf32>
    %9 = arith.cmpf ogt, %7, %8 : vector<1x512xf32>
    %10 = vector.broadcast %2 : f32 to vector<1x512xf32>
    %11 = arith.mulf %7, %10 : vector<1x512xf32>
    %12 = arith.select %9, %7, %11 : vector<1x512xi1>, vector<1x512xf32>
    %c0_2 = arith.constant 0 : index
    %c0_3 = arith.constant 0 : index
    %13 = vector.load %arg3[%c0_2, %c0_3] : memref<1x512xf32, #tpu.memory_space<vmem>>, vector<1x512xf32>
    tpu.vector_store %arg3[%c0_2, %c0_3], %12 {strides = array<i32>} : memref<1x512xf32, #tpu.memory_space<vmem>>, vector<1x512xf32>,
    return
  }
  func.func @transform_0(%arg0: i32) -> i32 {
    %c0_i32 = arith.constant 0 : i32
    %c0_i32_0 = arith.constant 0 : i32
    return %c0_i32 : i32
  }
  func.func @transform_1(%arg0: i32) -> (i32, i32) {
    %c0_i32 = arith.constant 0 : i32
    %c0_i32_0 = arith.constant 0 : i32
    return %arg0, %c0_i32 : i32, i32
  }
  func.func @transform_2(%arg0: i32) -> (i32, i32) {
    %c0_i32 = arith.constant 0 : i32
    %c0_i32_0 = arith.constant 0 : i32
    return %arg0, %c0_i32 : i32, i32
  }
}

</mosaic_0001>

<bundles_post_ra>
// kernel: tpu_custom_call.1
= control target key start
LH: loop header
LB: loop body
LE: loop exit
PB: predicated region body
PF: predicated region fallthrough
CT: control target
= control target key end

     0   :  { %7 = vsyncpa [#allocation5], 0  ;;  %s154_s0 = inlined_call_operand.hbm [shape: f32[3], index: 0, kind: input, shape index: {}]   ;;  %s155_s1 = inlined_call_operand.hbm [shape: f32[1,512], index: 1, kind: input, shape index: {}]   ;;  %s156_s2 = inlined_call_operand.hbm [shape: f32[1,512], index: 2, kind: output, shape index: {}]  }
   0x1   :  { %8 = vsyncpa [#allocation3], 0 }
   0x2   :  { %9 = vsyncpa [#allocation4], 0  ;;  %s127_s9 = smov [#allocation2]   ;;  %s128_s12 = smov [#allocation6]  }
   0x3   :  { %17 = dma.hbm_to_smem %s154_s0, 16, %s127_s9, [#allocation5]  }
   0x4   :  { %s24_s13 = sshll.u32 %s128_s12, 4  ;;  %s25_s13 = int_to_ptr.vmem [resolvable:$true] %s24_s13 }
   0x5   :  { %s89_s14 = scalar_lea.vmem %s25_s13, 64  ;;  %p94_p1 = scmp.lt.s32.totalorder %s25_s13, %s25_s13 }
   0x6   :  { %p90_p0 = scmp.ne.s32.totalorder %s25_s13, %s89_s14  ;;  %p95_p2 = scmp.lt.s32.totalorder %s89_s14, %s89_s14 }
   0x8   :  { %p96_p3 = por %p95_p2, %p94_p1 }
   0xa   :  { %p97_p4 = pnand %p96_p3, %p90_p0 }
   0xc   :  { %100 = shalt.err (!%p97_p4)
}
   0xd   :  { %27 = dma.hbm_to_vmem [thread:$0]  %s155_s1, 64, %s25_s13, [#allocation3]  }
   0xe   :  { %121 = dma.done.wait [#allocation5], 16  }
   0xf   :  { %122 = vsyncadd [#allocation5], 4294967280 }
  0x10   :  { %123 = dma.done.wait [#allocation3], 64  }
  0x11   :  { %124 = vsyncadd [#allocation3], 4294967232 }
  0x12   :  { %34 = sfence }
  0x13   :  { %s35_s0 = sld [smem:[#allocation2]]  ;;  %v38_v0 = vld [vmem:[#allocation6] sm:$0xf]  ;;  %v47_v4 = vlaneseq  ;;  %s129_s19 = smov [#allocation7]  }
  0x14   :  { %s68_s17 = sld [smem:[#allocation2 + $0x1]]  ;;  %s58_s20 = sshll.u32 %s129_s19, 4  ;;  %s59_s20 = int_to_ptr.vmem [resolvable:$true] %s58_s20 }
  0x15   :  { %s69_s18 = sld [smem:[#allocation2 + $0x2]]  ;;  %vm49_vm1 = vcmp.lt.s32.totalorder %v47_v4, 512  ;;  %s101_s1 = scalar_lea.vmem %s59_s20, 64 }
  0x16   :  { %p102_p5 = scmp.ne.s32.totalorder %s59_s20, %s101_s1  ;;  %p106_p6 = scmp.lt.s32.totalorder %s59_s20, %s59_s20 }
  0x17   :  { %p107_p7 = scmp.lt.s32.totalorder %s101_s1, %s101_s1 }
  0x19   :  { %v39_v1 = vstv %s35_s0  ;;  %p108_p8 = por %p107_p7, %p106_p6 }
  0x1a   :  { %v40_v2 = vmul.f32 %v39_v1, %v38_v0  ;;  %v41_v3 = vstv %s68_s17 }
  0x1b   :  { %v44_v5 = vstv %s69_s18  ;;  %p109_p9 = pnand %p108_p8, %p102_p5 }
  0x1c   :  { %v42_v6 = vadd.f32 %v41_v3, %v40_v2 }
  0x1e   :  { %vm43_vm0 = vcmp.gt.f32.partialorder %v42_v6, 0.0  ;;  %v45_v7 = vmul.f32 %v44_v5, %v42_v6 }
  0x20   :  { %v46_v8 = vsel %vm43_vm0, %v42_v6, %v45_v7 }
  0x21   :  { %51 = vst.msk [vmem:[#allocation7] sm:$0xf] %vm49_vm1, %v46_v8 }
  0x22   :  { %112 = shalt.err (!%p109_p9)
}
  0x23   :  { %61 = dma.vmem_to_hbm [thread:$0]  %s59_s20, 64, %s156_s2, [#allocation4]  }
  0x24   :  { %125 = dma.done.wait [#allocation4], 64  }
  0x25   :  { %126 = vsyncadd [#allocation4], 4294967232 }
  0x26   :  { %65 = vsyncpa [#allocation3], 1 }
  0x27   :  { %66 = vsyncpa [#allocation4], 1 }
  0x28   :  { %67 = vsyncpa [#allocation5], 1 }

</bundles_post_ra>
